<compile_context>
chip_gen: v7x
topology: tpu7x:2x2x1
jax: 0.10.0
libtpu: 0.0.40
codegen_flags: <defaults>
</compile_context>

<pallas_src>
import jax
import jax.numpy as jnp
from jax.experimental import pallas as pl
from jax.experimental.pallas import tpu as pltpu


def _attention_general_kernel(hidden_t_ref, enc_ref, wt_aug_ref, mask_ref, out_ref):
    """One L-tile of 'general' attention scores, softmaxed over the batch dim.

    hidden_t_ref : (H, B)         decoder hidden state, transposed
    enc_ref      : (TILE_L, B*H)  encoder-output tile; row = l, column = b*H + k
    wt_aug_ref   : (B*H + 1, H)   rows j < B*H hold W[:, j % H]; last row holds bias
    mask_ref     : (B*H, B)       mask[j, b] = 1.0 iff j // H == b   (block-diag selector)
    out_ref      : (B, TILE_L)    softmax-over-B scores, lane-dense layout
    """
    bh = mask_ref.shape[0]                                     # B * H (static)

    # Per-batch projection on the MXU (tiny: (B*H+1, H) x (H, B)):
    #   proj[j,  b] = hw[b, j % H] = sum_o W[o, j % H] * hidden[b, o]     for j <  B*H
    #   proj[BH, b] = hidden[b] . bias
    proj = jnp.dot(wt_aug_ref[...], hidden_t_ref[...],
                   preferred_element_type=jnp.float32)         # (B*H + 1, B)
    a = proj[:bh, :] * mask_ref[...]                           # block-diagonal hw, (B*H, B)
    hb = proj[bh:, :]                                          # (1, B) bias contribution

    # Scores for this tile (MXU): e[l, b] = enc[l, b, :] . hw[b, :] + hidden[b] . bias
    e_lb = jnp.dot(enc_ref[...], a,
                   preferred_element_type=jnp.float32) + hb    # (TILE_L, B)

    # softmax over the batch axis (faithful to F.softmax(energies, dim=0) in the module)
    m = jnp.max(e_lb, axis=-1, keepdims=True)
    p = jnp.exp(e_lb - m)
    denom = jnp.sum(p, axis=-1, keepdims=True)
    # NOTE: approx=True would move this onto the EUP for free, but costs ~1e-4 relative
    # accuracy; keep the exact reciprocal to preserve f32 parity with the reference.
    sm = p * pl.reciprocal(denom, approx=False)                # (TILE_L, B)

    # Small XLU transpose (plenty of slot slack) so the store is lane-dense over L.
    out_ref[...] = sm.T                                        # (B, TILE_L)


def attention_general(hidden, encoder_outputs, weight, bias, *, max_tile_l=1024):
    """hidden: (B, H) f32, encoder_outputs: (L, B, H) f32, weight: (H, H) [out, in], bias: (H,).
    Returns (B, 1, L) f32 — matches PyTorch Attention(method='general').forward()."""
    L, B, H = encoder_outputs.shape
    assert hidden.shape == (B, H)
    f32 = jnp.float32

    # ---- cheap one-time prep (free views / O(B*H^2) constants) ---------------------------
    enc_flat = encoder_outputs.astype(f32).reshape(L, B * H)        # contiguous view
    hidden_t = jnp.transpose(hidden.astype(f32))                    # (H, B)
    wt_exp = jnp.tile(jnp.transpose(weight.astype(f32)), (B, 1))    # (B*H, H): row j -> W[:, j%H]
    wt_aug = jnp.concatenate(
        [wt_exp, bias.astype(f32).reshape(1, H)], axis=0)           # (B*H + 1, H)
    mask = (jnp.arange(B * H)[:, None] // H
            == jnp.arange(B)[None, :]).astype(f32)                  # (B*H, B)

    # ---- choose the L tile: largest that keeps the double-buffered enc stream in VMEM ----
    row_bytes = B * H * 4
    budget = 8 * 1024 * 1024                                        # per enc buffer
    max_rows = max(128, ((budget // (2 * row_bytes)) // 128) * 128)
    tile_l = min(L, max_rows, max_tile_l)
    if tile_l < L:                                                  # tiled: 128-aligned tiles
        tile_l = max(128, (tile_l // 128) * 128)
        l_pad = pl.cdiv(L, tile_l) * tile_l
        enc_flat = jnp.pad(enc_flat, ((0, l_pad - L), (0, 0)))      # rows are independent
    else:                                                           # one tile covers all of L
        l_pad = L
    num_tiles = l_pad // tile_l

    out_bl = pl.pallas_call(
        _attention_general_kernel,
        out_shape=jax.ShapeDtypeStruct((B, l_pad), f32),
        grid=(num_tiles,),
        in_specs=[
            pl.BlockSpec((H, B), lambda i: (0, 0)),                 # hidden_t : resident
            pl.BlockSpec((tile_l, B * H), lambda i: (i, 0)),        # enc tile : pipelined over L
            pl.BlockSpec((B * H + 1, H), lambda i: (0, 0)),         # W + bias : resident
            pl.BlockSpec((B * H, B), lambda i: (0, 0)),             # selector : resident
        ],
        out_specs=pl.BlockSpec((B, tile_l), lambda i: (0, i)),      # lane-dense (B, L) output
        compiler_params=pltpu.CompilerParams(
            dimension_semantics=("parallel",),                      # shard tiles across TCs (v7x)
            vmem_limit_bytes=32 * 1024 * 1024,
        ),
    )(hidden_t, enc_flat, wt_aug, mask)

    if l_pad != L:
        out_bl = out_bl[:, :L]
    return out_bl[:, None, :]                                       # (B, 1, L)


def _reference(hidden, encoder_outputs, weight, bias):
    """Pure-JAX reference mirroring the PyTorch loops."""
    energy_vec = jnp.einsum('ok,lbk->lbo', weight, encoder_outputs) + bias   # (L, B, H)
    energies = jnp.einsum('bo,lbo->bl', hidden, energy_vec)                  # (B, L)
    return jax.nn.softmax(energies, axis=0)[:, None, :]                      # (B, 1, L)


if __name__ == "__main__":
    B, L, H = 2, 8, 32  # batch, seq_len, hidden_size

    key = jax.random.PRNGKey(0)
    k1, k2, k3, k4 = jax.random.split(key, 4)
    hidden = jax.random.normal(k1, (B, H), dtype=jnp.float32)
    encoder_outputs = jax.random.normal(k2, (L, B, H), dtype=jnp.float32)
    # nn.Linear(H, H) params ~ U(-1/sqrt(H), 1/sqrt(H))
    bound = 1.0 / (H ** 0.5)
    weight = jax.random.uniform(k3, (H, H), minval=-bound, maxval=bound, dtype=jnp.float32)
    bias = jax.random.uniform(k4, (H,), minval=-bound, maxval=bound, dtype=jnp.float32)

    out = jax.block_until_ready(attention_general(hidden, encoder_outputs, weight, bias))
    ref = _reference(hidden, encoder_outputs, weight, bias)

    assert out.shape == (B, 1, L), out.shape
    max_err = float(jnp.max(jnp.abs(out - ref)))
    assert jnp.allclose(out, ref, atol=1e-4, rtol=1e-4), max_err
    print("KERNEL_OK")
</pallas_src>

<mosaic_0001>
module attributes {stable_mosaic.version = 11 : i64} {
  func.func @_attention_general_kernel(%arg0: i32, %arg1: memref<32x2xf32, #tpu.memory_space<vmem>>, %arg2: memref<8x64xf32, #tpu.memory_space<vmem>>, %arg3: memref<65x32xf32, #tpu.memory_space<vmem>>, %arg4: memref<64x2xf32, #tpu.memory_space<vmem>>, %arg5: memref<2x8xf32, #tpu.memory_space<vmem>>) attributes {dimension_semantics = [#tpu.dimension_semantics<parallel>], iteration_bounds = array<i64: 1>, scalar_prefetch = 0 : i64, scratch_operands = 0 : i64, tpu.core_type = #tpu.core_type<tc>, window_params = [{pipeline_mode = #tpu.pipeline_mode<synchronous>, transform_indices = @transform_0, window_bounds = array<i64: 32, 2>}, {transform_indices = @transform_1, window_bounds = array<i64: 8, 64>}, {pipeline_mode = #tpu.pipeline_mode<synchronous>, transform_indices = @transform_2, window_bounds = array<i64: 65, 32>}, {pipeline_mode = #tpu.pipeline_mode<synchronous>, transform_indices = @transform_3, window_bounds = array<i64: 64, 2>}, {transform_indices = @transform_4, window_bounds = array<i64: 2, 8>}]} {
    %c0 = arith.constant 0 : index
    %c0_0 = arith.constant 0 : index
    %0 = vector.load %arg3[%c0, %c0_0] : memref<65x32xf32, #tpu.memory_space<vmem>>, vector<65x32xf32>
    %c0_1 = arith.constant 0 : index
    %c0_2 = arith.constant 0 : index
    %1 = vector.load %arg1[%c0_1, %c0_2] : memref<32x2xf32, #tpu.memory_space<vmem>>, vector<32x2xf32>
    %cst = arith.constant dense<0.000000e+00> : vector<65x2xf32>
    %2 = tpu.matmul %0, %1, %cst {dimension_numbers = #tpu.dot_dimension_numbers<[1], [0], [0], [1], [0, 0, 1, 1], [], []>} : vector<65x32xf32>, vector<32x2xf32>, vector<65x2xf32> -> vector<65x2xf32>
    %3 = vector.extract_strided_slice %2 {offsets = [0, 0], sizes = [64, 2], strides = [1, 1]} : vector<65x2xf32> to vector<64x2xf32>
    %c0_3 = arith.constant 0 : index
    %c0_4 = arith.constant 0 : index
    %4 = vector.load %arg4[%c0_3, %c0_4] : memref<64x2xf32, #tpu.memory_space<vmem>>, vector<64x2xf32>
    %5 = arith.mulf %3, %4 : vector<64x2xf32>
    %6 = vector.extract_strided_slice %2 {offsets = [64, 0], sizes = [1, 2], strides = [1, 1]} : vector<65x2xf32> to vector<1x2xf32>
    %c0_5 = arith.constant 0 : index
    %c0_6 = arith.constant 0 : index
    %7 = vector.load %arg2[%c0_5, %c0_6] : memref<8x64xf32, #tpu.memory_space<vmem>>, vector<8x64xf32>
    %cst_7 = arith.constant dense<0.000000e+00> : vector<8x2xf32>
    %8 = tpu.matmul %7, %5, %cst_7 {dimension_numbers = #tpu.dot_dimension_numbers<[1], [0], [0], [1], [0, 0, 1, 1], [], []>} : vector<8x64xf32>, vector<64x2xf32>, vector<8x2xf32> -> vector<8x2xf32>
    %9 = vector.broadcast %6 : vector<1x2xf32> to vector<8x2xf32>
    %10 = arith.addf %8, %9 : vector<8x2xf32>
    %cst_8 = arith.constant dense<0xFF800000> : vector<8xf32>
    %11 = vector.multi_reduction <maximumf>, %10, %cst_8 [1] : vector<8x2xf32> to vector<8xf32>
    %12 = vector.shape_cast %11 : vector<8xf32> to vector<8x1xf32>
    %13 = vector.broadcast %12 : vector<8x1xf32> to vector<8x2xf32>
    %14 = arith.subf %10, %13 : vector<8x2xf32>
    %15 = math.exp %14 : vector<8x2xf32>
    %cst_9 = arith.constant dense<0.000000e+00> : vector<8xf32>
    %16 = vector.multi_reduction <add>, %15, %cst_9 [1] : vector<8x2xf32> to vector<8xf32>
    %17 = vector.shape_cast %16 : vector<8xf32> to vector<8x1xf32>
    %18 = tpu.reciprocal %17 : vector<8x1xf32> -> vector<8x1xf32>
    %19 = vector.broadcast %18 : vector<8x1xf32> to vector<8x2xf32>
    %20 = arith.mulf %15, %19 : vector<8x2xf32>
    %21 = tpu.transpose %20, [1, 0] : vector<8x2xf32> -> vector<2x8xf32>
    %c0_10 = arith.constant 0 : index
    %c0_11 = arith.constant 0 : index
    %22 = vector.load %arg5[%c0_10, %c0_11] : memref<2x8xf32, #tpu.memory_space<vmem>>, vector<2x8xf32>
    tpu.vector_store %arg5[%c0_10, %c0_11], %21 {strides = array<i32>} : memref<2x8xf32, #tpu.memory_space<vmem>>, vector<2x8xf32>,
    return
  }
  func.func @transform_0(%arg0: i32) -> (i32, i32) {
    %c0_i32 = arith.constant 0 : i32
    %c0_i32_0 = arith.constant 0 : i32
    %c0_i32_1 = arith.constant 0 : i32
    return %c0_i32, %c0_i32_0 : i32, i32
  }
  func.func @transform_1(%arg0: i32) -> (i32, i32) {
    %c0_i32 = arith.constant 0 : i32
    %c0_i32_0 = arith.constant 0 : i32
    return %arg0, %c0_i32 : i32, i32
  }
  func.func @transform_2(%arg0: i32) -> (i32, i32) {
    %c0_i32 = arith.constant 0 : i32
    %c0_i32_0 = arith.constant 0 : i32
    %c0_i32_1 = arith.constant 0 : i32
    return %c0_i32, %c0_i32_0 : i32, i32
  }
  func.func @transform_3(%arg0: i32) -> (i32, i32) {
    %c0_i32 = arith.constant 0 : i32
    %c0_i32_0 = arith.constant 0 : i32
    %c0_i32_1 = arith.constant 0 : i32
    return %c0_i32, %c0_i32_0 : i32, i32
  }
  func.func @transform_4(%arg0: i32) -> (i32, i32) {
    %c0_i32 = arith.constant 0 : i32
    %c0_i32_0 = arith.constant 0 : i32
    return %c0_i32, %arg0 : i32, i32
  }
}

</mosaic_0001>

<bundles_post_ra>
// kernel: tpu_custom_call.1
= control target key start
LH: loop header
LB: loop body
LE: loop exit
PB: predicated region body
PF: predicated region fallthrough
CT: control target
= control target key end

     0   :  { %v464_v3 = vmov 0.0|0.0   ;;  %vm465_vm0 = vmmov 0   ;;  %v466_v6 = vmov 0.0   ;;  %s598_s0 = inlined_call_operand.vmem [shape: f32[32,2], index: 0, kind: input, shape index: {}]   ;;  %s599_s1 = inlined_call_operand.vmem [shape: f32[8,64], index: 1, kind: input, shape index: {}]   ;;  %s600_s2 = inlined_call_operand.vmem [shape: f32[65,32], index: 2, kind: input, shape index: {}]   ;;  %s601_s3 = inlined_call_operand.vmem [shape: f32[64,2], index: 3, kind: input, shape index: {}]   ;;  %s602_s4 = inlined_call_operand.hbm [shape: f32[2,8], index: 4, kind: output, shape index: {}]  }
   0x1   :  { %v27_v0 = vld [vmem:[%s598_s0] sm:$0xff]  ;;  %v28_v1 = vld [vmem:[%s598_s0 + $0x8] sm:$0xff]  ;;  %v29_v2 = vld [vmem:[%s598_s0 + $0x10] sm:$0xff]  ;;  %410 = vmatprep.subr.bf16.mxu0 %v464_v3  ;;  %364 = vmatprep.mubr.msk.f32.mxu0 %vm465_vm0, %v466_v6 }
   0x2   :  { %v411_v4 = vpack.c.bf16 %v28_v1, %v27_v0  ;;  %v30_v5 = vld [vmem:[%s598_s0 + $0x18] sm:$0xff]  ;;  %428 = vmatprep.subr.bf16.mxu1 %v464_v3  ;;  %379 = vmatprep.mubr.msk.f32.mxu1 %vm465_vm0, %v466_v6 }
   0x3   :  { %v414_v7 = vpack.c.bf16 %v30_v5, %v29_v2 }
   0x4   :  { %412 = vmatpush3.bf16.msra.mxu0 %v411_v4  ;;  %430 = vmatpush3.bf16.msra.mxu1 %v411_v4 }
   0x5   :  { %413 = vmatprep.subr.bf16.mxu0 %v464_v3  ;;  %429 = vmatprep.subr.bf16.mxu1 %v464_v3 }
   0x6   :  { %9 = vsyncpa [#allocation3], 0  ;;  %v18_v8 = vld [vmem:[%s600_s2] sm:$0xff]  ;;  %vm31_vm1 = vcmask 261120   ;;  %v23_v9 = vld [vmem:[%s600_s2 + $0x28] sm:$0xff]  ;;  %vm190_vm2 = vcmask 523264   ;;  %v186_v56 = vlaneseq }
   0x7   :  { %v19_v10 = vld [vmem:[%s600_s2 + $0x8] sm:$0xff]  ;;  %v24_v11 = vld [vmem:[%s600_s2 + $0x30] sm:$0xff]  ;;  %v25_v13 = vld [vmem:[%s600_s2 + $0x38] sm:$0xff]  ;;  %vm264_vm3 = vcmask 15360   ;;  %vm308_vm4 = vcmask 58368  }
   0x8   :  { %415 = vmatpush3.bf16.msra.mxu0 %v414_v7  ;;  %431 = vmatpush3.bf16.msra.mxu1 %v414_v7  ;;  %v20_v12 = vld [vmem:[%s600_s2 + $0x10] sm:$0xff]  ;;  %v21_v14 = vld [vmem:[%s600_s2 + $0x18] sm:$0xff]  ;;  %v22_v15 = vld [vmem:[%s600_s2 + $0x20] sm:$0xff]  ;;  %v187_v57 = vshrl.u32 %v186_v56, 7 }
   0x9   :  { %416 = vmatprep.subr.bf16.mxu1 %v464_v3  ;;  %v26_v16 = vld [vmem:[%s600_s2 + $0x40] sm:$0x1]  ;;  %v170_v22 = vld [vmem:[%s601_s3 + $0x8] sm:$0xff]  ;;  %v175_v25 = vld [vmem:[%s601_s3 + $0x30] sm:$0xff] }
   0xa   :  { %v169_v21 = vld [vmem:[%s601_s3] sm:$0xff]  ;;  %v176_v30 = vld [vmem:[%s601_s3 + $0x38] sm:$0xff]  ;;  %v171_v38 = vld [vmem:[%s601_s3 + $0x10] sm:$0xff]  ;;  %v188_v58 = vsub.s32 0, %v187_v57 }
   0xb   :  { %365 = vmatmul.mubr.msk.f32.vlgmr.msra.gmra.mrb[0].mxu0 %vm31_vm1, %v18_v8  ;;  %380 = vmatmul.mubr.msk.f32.vlgmr.msra.gmra.mrb[0].mxu1 %vm31_vm1, %v23_v9  ;;  %v172_v39 = vld [vmem:[%s601_s3 + $0x18] sm:$0xff]  ;;  %v174_v45 = vld [vmem:[%s601_s3 + $0x28] sm:$0xff]  ;;  %v173_v46 = vld [vmem:[%s601_s3 + $0x20] sm:$0xff] }
   0xc   :  { %367 = vmatprep.mubr.msk.f32.mxu0 %vm465_vm0, %v466_v6  ;;  %382 = vmatprep.mubr.msk.f32.mxu1 %vm465_vm0, %v466_v6  ;;  %v185_v53 = vld [vmem:[%s599_s1] sm:$0xff]  ;;  %s467_s1 = smov [#allocation2]  }
   0xd   :  { %s316_s3 = sshll.u32 %s467_s1, 4  ;;  %s317_s3 = int_to_ptr.vmem [resolvable:$true] %s316_s3 }
   0xe   :  { %s440_s30 = scalar_lea.vmem %s317_s3, 32  ;;  %p445_p1 = scmp.lt.s32.totalorder %s317_s3, %s317_s3 }
   0xf   :  { %368 = vmatmul.mubr.msk.f32.gmra.mrb[2].mxu0 %vm31_vm1, %v19_v10  ;;  %383 = vmatmul.mubr.msk.f32.gmra.mrb[2].mxu1 %vm31_vm1, %v24_v11  ;;  %p441_p0 = scmp.ne.s32.totalorder %s317_s3, %s440_s30  ;;  %p446_p2 = scmp.lt.s32.totalorder %s440_s30, %s440_s30 }
  0x10   :  { %370 = vmatprep.mubr.msk.f32.mxu0 %vm465_vm0, %v466_v6  ;;  %385 = vmatprep.mubr.msk.f32.mxu1 %vm465_vm0, %v466_v6 }
  0x11   :  { %p447_p3 = por %p446_p2, %p445_p1 }
  0x13   :  { %371 = vmatmul.mubr.msk.f32.gmra.mrb[4].mxu0 %vm31_vm1, %v20_v12  ;;  %386 = vmatmul.mubr.msk.f32.gmra.mrb[4].mxu1 %vm31_vm1, %v25_v13  ;;  %p448_p4 = pnand %p447_p3, %p441_p0 }
  0x14   :  { %373 = vmatprep.mubr.msk.f32.mxu0 %vm465_vm0, %v466_v6  ;;  %388 = vmatprep.mubr.msk.f32.mxu1 %vm465_vm0, %v466_v6 }
  0x17   :  { %374 = vmatmul.mubr.msk.f32.gmra.mrb[6].mxu0 %vm31_vm1, %v21_v14  ;;  %389 = vmatmul.mubr.msk.f32.gmra.mrb[6].mxu1 %vm31_vm1, %v26_v16 }
  0x18   :  { %376 = vmatprep.mubr.msk.f32.mxu0 %vm465_vm0, %v466_v6  ;;  %407 = vmatprep.mubr.msk.f32.mxu1 %vm465_vm0, %v466_v6 }
  0x1b   :  { %377 = vmatmul.mubr.msk.f32.gmra.mrb[8].mxu0 %vm31_vm1, %v22_v15 }
  0xde   :  { %v125_v17 = vpop.f32.mrb[0].mxu0  ;;  %v150_v18 = vpop.f32.mrb[0].mxu1 }
  0xdf   :  { %v366_v19 = vpop.f32.mrb[1].mxu0  ;;  %v381_v20 = vpop.f32.mrb[1].mxu1  ;;  %v177_v26 = vmul.f32 %v169_v21, %v125_v17  ;;  %v182_v49 = vmul.f32 %v174_v45, %v150_v18 }
  0xe2   :  { %v130_v23 = vpop.f32.mrb[2].mxu0  ;;  %v155_v24 = vpop.f32.mrb[2].mxu1 }
  0xe3   :  { %v178_v27 = vmul.f32 %v170_v22, %v130_v23  ;;  %v369_v28 = vpop.f32.mrb[3].mxu0  ;;  %v384_v29 = vpop.f32.mrb[3].mxu1  ;;  %v183_v32 = vmul.f32 %v175_v25, %v155_v24 }
  0xe5   :  { %v417_v31 = vpack.c.bf16 %v178_v27, %v177_v26 }
  0xe6   :  { %v135_v33 = vpop.f32.mrb[4].mxu0  ;;  %v160_v34 = vpop.f32.mrb[4].mxu1 }
  0xe7   :  { %v372_v35 = vpop.f32.mrb[5].mxu0  ;;  %418 = vmatpush3.bf16.msra.mxu1 %v417_v31  ;;  %v184_v36 = vmul.f32 %v176_v30, %v160_v34  ;;  %v387_v37 = vpop.f32.mrb[5].mxu1  ;;  %v179_v42 = vmul.f32 %v171_v38, %v135_v33 }
  0xe8   :  { %419 = vmatprep.subr.bf16.mxu1 %v464_v3 }
  0xe9   :  { %v426_v40 = vpack.c.bf16 %v184_v36, %v183_v32 }
  0xea   :  { %v140_v41 = vpop.f32.mrb[6].mxu0  ;;  %v165_v54 = vpop.f32.mrb[6].mxu1 }
  0xeb   :  { %v180_v43 = vmul.f32 %v172_v39, %v140_v41  ;;  %v375_v44 = vpop.f32.mrb[7].mxu0  ;;  %v390_v55 = vpop.f32.mrb[7].mxu1  ;;  %v189_v59 = vrot.slane %v165_v54, %v188_v58 }
  0xed   :  { %v420_v47 = vpack.c.bf16 %v180_v43, %v179_v42 }
  0xee   :  { %v145_v48 = vpop.f32.mrb[8].mxu0 }
  0xef   :  { %v181_v50 = vmul.f32 %v173_v46, %v145_v48  ;;  %v378_v51 = vpop.f32.mrb[9].mxu0  ;;  %421 = vmatpush3.bf16.msra.mxu1 %v420_v47 }
  0xf0   :  { %422 = vmatprep.subr.bf16.mxu1 %v464_v3 }
  0xf1   :  { %v423_v52 = vpack.c.bf16 %v182_v49, %v181_v50 }
  0xf3   :  { %424 = vmatpush3.bf16.msra.mxu1 %v423_v52 }
  0xf4   :  { %425 = vmatprep.subr.bf16.mxu1 %v464_v3 }
  0xf7   :  { %427 = vmatpush3.bf16.msra.mxu1 %v426_v40 }
  0xfa   :  { %408 = vmatmul.mubr.msk.f32.vlgmr.msra.gmra.mrb[8].mxu1 %vm190_vm2, %v185_v53 }
 0x1cd   :  { %v260_v60 = vpop.f32.mrb[8].mxu1 }
 0x1ce   :  { %v261_v61 = vadd.f32 %v260_v60, %v189_v59  ;;  %v409_v62 = vpop.f32.mrb[9].mxu1 }
 0x1d0   :  { %v265_v63 = vsel %vm264_vm3, %v261_v61, -inf }
 0x1d1   :  { %266 = vmax.xlane.f32.xlu0 %v265_v63 }
 0x25e   :  { %v267_v0 = vpop.xlane.xlu0 %266 }
 0x25f   :  { %v268_v1 = vsub.f32 %v261_v61, %v267_v0 }
 0x261   :  { %v269_v2 = vmul.f32 1.442695, %v268_v1 }
 0x263   :  { %436 = vpow2.f32 %v269_v2 }
 0x26d   :  { %v437_v3 = vpop.eup %436 }
 0x26e   :  { %v271_v4 = vsel %vm264_vm3, %v437_v3, 0.0 }
 0x26f   :  { %272 = vadd.xlane.f32.xlu0 %v271_v4 }
 0x2fc   :  { %v273_v5 = vpop.xlane.xlu0 %272 }
 0x2fd   :  { %438 = vrcp.f32 %v273_v5 }
 0x307   :  { %v439_v6 = vpop.eup %438 }
 0x308   :  { %v275_v7 = vmul.f32 %v439_v6, %v437_v3 }
 0x30a   :  { %276 = vxpose.xlu1.b32.start.end [1/1] (short) (narrow) %v275_v7, 8 }
 0x38a   :  { %v292_v8 = vpop.trf.xlu1 }
 0x38b   :  { %309 = vst.msk [vmem:[#allocation2] sm:$0x3] %vm308_vm4, %v292_v8 }
 0x38c   :  { %451 = shalt.err (!%p448_p4)
}
 0x38d   :  { %s452_s7 = scalar_lea.hbm %s602_s4, 32 }
 0x38e   :  { %p453_p5 = scmp.ne.s32.totalorder %s602_s4, %s452_s7  ;;  %p456_p6 = scmp.lt.u32.totalorder %s452_s7, %s602_s4 }
 0x390   :  { %p458_p7 = pnand %p456_p6, %p453_p5 }
 0x392   :  { %461 = shalt.err (!%p458_p7)
}
 0x393   :  { %319 = dma.vmem_to_hbm [thread:$0]  %s317_s3, 32, %s602_s4, [#allocation3]  }
 0x394   :  { %462 = dma.done.wait [#allocation3], 32  }
 0x395   :  { %463 = vsyncadd [#allocation3], 4294967264 }
 0x396   :  { %323 = vsyncpa [#allocation3], 1 }

</bundles_post_ra>
